<compile_context>
chip_gen: v7x
topology: tpu7x:2x2x1
jax: 0.10.0
libtpu: 0.0.40
codegen_flags: <defaults>
</compile_context>

<pallas_src>
import jax
import jax.numpy as jnp
from jax.experimental import pallas as pl
from jax.experimental.pallas import tpu as pltpu


def _fused_loss_kernel(xa_ref, pa_ref, qa_ref,
                       xb_ref, pb_ref, qb_ref, mb_ref,
                       w1x_ref, w1p_ref, w1q_ref, b1_ref,
                       w2_ref, b2_ref,
                       sse_a_ref, sse_b_ref):
    """Fused synthetic-model forward for BOTH branches + SSE reductions.

    Layout: channels/features on sublanes, pixels (H*W) on lanes.
      xa/pa/qa : (N, C_x|C_p|C_q, HWa)  full-resolution inputs
      xb/pb/qb : (N, ...,         HWb)  reduced-resolution inputs
      mb       : (N, C_out, HWb)        reduced-branch target
      w1x/w1p/w1q : (HID, C_*)          pre-transposed W1 slices
      b1       : (HID, 1)
      w2       : (C_out, HID)           pre-transposed W2
      b2       : (C_out, 1)
      sse_a/b  : (1, 1)                 per-branch sum of squared errors
    """
    w1x = w1x_ref[...]
    w1p = w1p_ref[...]
    w1q = w1q_ref[...]
    b1 = b1_ref[...]
    w2 = w2_ref[...]
    b2 = b2_ref[...]
    c_out = w2.shape[0]

    def branch_sse(x_ref, p_ref, q_ref, tgt_ref):
        n_batch, _, hw = x_ref.shape
        acc = jnp.zeros((c_out, hw), jnp.float32)
        for n in range(n_batch):          # tiny static batch -> unrolled at trace time
            h = (jnp.dot(w1x, x_ref[n], preferred_element_type=jnp.float32)
                 + jnp.dot(w1p, p_ref[n], preferred_element_type=jnp.float32)
                 + jnp.dot(w1q, q_ref[n], preferred_element_type=jnp.float32)
                 + b1)
            h = jnp.maximum(h, 0.0)
            y = jnp.dot(w2, h, preferred_element_type=jnp.float32) + b2
            d = y - tgt_ref[n]
            acc = acc + d * d             # defer the cross-lane reduction
        return jnp.sum(acc)               # single XLU reduce per branch

    sse_a = branch_sse(xa_ref, pa_ref, qa_ref, qa_ref)   # target = Q_hr itself
    sse_b = branch_sse(xb_ref, pb_ref, qb_ref, mb_ref)   # target = M
    sse_a_ref[...] = jnp.zeros_like(sse_a_ref) + sse_a
    sse_b_ref[...] = jnp.zeros_like(sse_b_ref) + sse_b


def _nchw_to_c_pix(x):
    """NCHW -> (N, C, H*W): channels on sublanes, pixels on lanes (free reshape)."""
    n, c, h, w = x.shape
    return x.reshape(n, c, h * w).astype(jnp.float32)


@jax.jit
def trainer_forward(X, P, D, L, M, Q_hr, Q_lr, params):
    """JAX/Pallas equivalent of Trainer.forward -> scalar loss."""
    w1, b1, w2, b2 = params
    c_x = X.shape[1]
    c_p = P.shape[1]

    # Pre-transposed weight slabs (tiny, computed once under jit):
    #   h = relu(W1x@x + W1p@p + W1q@q + b1);  y = W2@h + b2
    w1x_t = jnp.transpose(w1[:c_x]).astype(jnp.float32)
    w1p_t = jnp.transpose(w1[c_x:c_x + c_p]).astype(jnp.float32)
    w1q_t = jnp.transpose(w1[c_x + c_p:]).astype(jnp.float32)
    b1_c = jnp.reshape(b1, (-1, 1)).astype(jnp.float32)
    w2_t = jnp.transpose(w2).astype(jnp.float32)
    b2_c = jnp.reshape(b2, (-1, 1)).astype(jnp.float32)

    xa, pa, qa = _nchw_to_c_pix(X), _nchw_to_c_pix(P), _nchw_to_c_pix(Q_hr)
    xb, pb, qb = _nchw_to_c_pix(D), _nchw_to_c_pix(L), _nchw_to_c_pix(Q_lr)
    mb = _nchw_to_c_pix(M)

    vmem = pl.BlockSpec(memory_space=pltpu.MemorySpace.VMEM)
    sse_a, sse_b = pl.pallas_call(
        _fused_loss_kernel,
        out_shape=(jax.ShapeDtypeStruct((1, 1), jnp.float32),
                   jax.ShapeDtypeStruct((1, 1), jnp.float32)),
        in_specs=[vmem] * 13,
        out_specs=(vmem, vmem),
    )(xa, pa, qa, xb, pb, qb, mb, w1x_t, w1p_t, w1q_t, b1_c, w2_t, b2_c)

    content_full_loss = sse_a[0, 0] / jnp.float32(Q_hr.size)
    content_reduced_loss = sse_b[0, 0] / jnp.float32(M.size)

    # MSE of two scalars == squared difference.
    scale_difference_loss = jnp.where(
        content_full_loss < content_reduced_loss,
        jnp.float32(0.0),
        (content_full_loss - content_reduced_loss) ** 2)

    return (1.0 * content_full_loss
            + 1.0 * content_reduced_loss
            + 2.0 * scale_difference_loss)


def init_params(key, c_x, c_p, c_q, hidden, c_out):
    k1, k2 = jax.random.split(key)
    f_in = c_x + c_p + c_q
    w1 = jax.random.normal(k1, (f_in, hidden), jnp.float32) * 0.1
    b1 = jnp.zeros((1, hidden), jnp.float32)
    w2 = jax.random.normal(k2, (hidden, c_out), jnp.float32) * 0.1
    b2 = jnp.zeros((1, c_out), jnp.float32)
    return (w1, b1, w2, b2)


# ---------- pure-JAX reference (correctness check only) ----------
def _model_ref(x, p, q, params):
    w1, b1, w2, b2 = params
    def rows(a):
        return jnp.transpose(a, (0, 2, 3, 1)).reshape(-1, a.shape[1])
    f = jnp.concatenate([rows(x), rows(p), rows(q)], axis=-1)
    h = jnp.maximum(f @ w1 + b1, 0.0)
    return h @ w2 + b2, rows


def trainer_forward_ref(X, P, D, L, M, Q_hr, Q_lr, params):
    ya, rows = _model_ref(X, P, Q_hr, params)
    yb, _ = _model_ref(D, L, Q_lr, params)
    cfl = jnp.mean((ya - rows(Q_hr)) ** 2)
    crl = jnp.mean((yb - rows(M)) ** 2)
    sdl = jnp.where(cfl < crl, 0.0, (cfl - crl) ** 2)
    return cfl + crl + 2.0 * sdl


if __name__ == "__main__":
    key = jax.random.PRNGKey(0)
    kx, kp, kq, kd, kl, kql, km, kw = jax.random.split(key, 8)

    N, C, H, W = 2, 4, 16, 16       # full-resolution branch (NCHW)
    Hr, Wr = 8, 8                   # reduced-resolution branch
    C_P = 1                         # panchromatic band
    HIDDEN = 32

    # Full-resolution inputs
    X = jax.random.normal(kx, (N, C, H, W), jnp.float32)
    P = jax.random.normal(kp, (N, C_P, H, W), jnp.float32)
    Q_hr = jax.random.normal(kq, (N, C, H, W), jnp.float32)

    # Reduced-resolution inputs
    D = jax.random.normal(kd, (N, C, Hr, Wr), jnp.float32)
    L = jax.random.normal(kl, (N, C_P, Hr, Wr), jnp.float32)
    Q_lr = jax.random.normal(kql, (N, C, Hr, Wr), jnp.float32)
    M = jax.random.normal(km, (N, C, Hr, Wr), jnp.float32)

    params = init_params(kw, C, C_P, C, HIDDEN, C)

    loss = trainer_forward(X, P, D, L, M, Q_hr, Q_lr, params)
    loss = jax.block_until_ready(loss)

    loss_ref = trainer_forward_ref(X, P, D, L, M, Q_hr, Q_lr, params)
    assert jnp.isfinite(loss)
    assert jnp.allclose(loss, loss_ref, rtol=2e-2, atol=1e-3), (loss, loss_ref)
    print("KERNEL_OK")
</pallas_src>

<mosaic_0001>
module attributes {stable_mosaic.version = 11 : i64} {
  func.func @_fused_loss_kernel(%arg0: memref<2x4x256xf32, #tpu.memory_space<vmem>>, %arg1: memref<2x1x256xf32, #tpu.memory_space<vmem>>, %arg2: memref<2x4x256xf32, #tpu.memory_space<vmem>>, %arg3: memref<2x4x64xf32, #tpu.memory_space<vmem>>, %arg4: memref<2x1x64xf32, #tpu.memory_space<vmem>>, %arg5: memref<2x4x64xf32, #tpu.memory_space<vmem>>, %arg6: memref<2x4x64xf32, #tpu.memory_space<vmem>>, %arg7: memref<32x4xf32, #tpu.memory_space<vmem>>, %arg8: memref<32x1xf32, #tpu.memory_space<vmem>>, %arg9: memref<32x4xf32, #tpu.memory_space<vmem>>, %arg10: memref<32x1xf32, #tpu.memory_space<vmem>>, %arg11: memref<4x32xf32, #tpu.memory_space<vmem>>, %arg12: memref<4x1xf32, #tpu.memory_space<vmem>>, %arg13: memref<1x1xf32, #tpu.memory_space<vmem>>, %arg14: memref<1x1xf32, #tpu.memory_space<vmem>>) attributes {dimension_semantics = [], scalar_prefetch = 0 : i64, scratch_operands = 0 : i64, tpu.core_type = #tpu.core_type<tc>} {
    %c0 = arith.constant 0 : index
    %c0_0 = arith.constant 0 : index
    %0 = vector.load %arg7[%c0, %c0_0] : memref<32x4xf32, #tpu.memory_space<vmem>>, vector<32x4xf32>
    %c0_1 = arith.constant 0 : index
    %c0_2 = arith.constant 0 : index
    %1 = vector.load %arg8[%c0_1, %c0_2] : memref<32x1xf32, #tpu.memory_space<vmem>>, vector<32x1xf32>
    %c0_3 = arith.constant 0 : index
    %c0_4 = arith.constant 0 : index
    %2 = vector.load %arg9[%c0_3, %c0_4] : memref<32x4xf32, #tpu.memory_space<vmem>>, vector<32x4xf32>
    %c0_5 = arith.constant 0 : index
    %c0_6 = arith.constant 0 : index
    %3 = vector.load %arg10[%c0_5, %c0_6] : memref<32x1xf32, #tpu.memory_space<vmem>>, vector<32x1xf32>
    %c0_7 = arith.constant 0 : index
    %c0_8 = arith.constant 0 : index
    %4 = vector.load %arg11[%c0_7, %c0_8] : memref<4x32xf32, #tpu.memory_space<vmem>>, vector<4x32xf32>
    %c0_9 = arith.constant 0 : index
    %c0_10 = arith.constant 0 : index
    %5 = vector.load %arg12[%c0_9, %c0_10] : memref<4x1xf32, #tpu.memory_space<vmem>>, vector<4x1xf32>
    %cst = arith.constant 0.000000e+00 : f32
    %6 = vector.broadcast %cst : f32 to vector<4x256xf32>
    %c0_11 = arith.constant 0 : index
    %c0_12 = arith.constant 0 : index
    %c0_13 = arith.constant 0 : index
    %7 = vector.load %arg0[%c0_11, %c0_12, %c0_13] : memref<2x4x256xf32, #tpu.memory_space<vmem>>, vector<1x4x256xf32>
    %8 = vector.shape_cast %7 : vector<1x4x256xf32> to vector<4x256xf32>
    %cst_14 = arith.constant dense<0.000000e+00> : vector<32x256xf32>
    %9 = tpu.matmul %0, %8, %cst_14 {dimension_numbers = #tpu.dot_dimension_numbers<[1], [0], [0], [1], [0, 0, 1, 1], [], []>} : vector<32x4xf32>, vector<4x256xf32>, vector<32x256xf32> -> vector<32x256xf32>
    %c0_15 = arith.constant 0 : index
    %c0_16 = arith.constant 0 : index
    %c0_17 = arith.constant 0 : index
    %10 = vector.load %arg1[%c0_15, %c0_16, %c0_17] : memref<2x1x256xf32, #tpu.memory_space<vmem>>, vector<1x1x256xf32>
    %11 = vector.shape_cast %10 : vector<1x1x256xf32> to vector<1x256xf32>
    %cst_18 = arith.constant dense<0.000000e+00> : vector<32x256xf32>
    %12 = tpu.matmul %1, %11, %cst_18 {dimension_numbers = #tpu.dot_dimension_numbers<[1], [0], [0], [1], [0, 0, 1, 1], [], []>} : vector<32x1xf32>, vector<1x256xf32>, vector<32x256xf32> -> vector<32x256xf32>
    %13 = arith.addf %9, %12 : vector<32x256xf32>
    %c0_19 = arith.constant 0 : index
    %c0_20 = arith.constant 0 : index
    %c0_21 = arith.constant 0 : index
    %14 = vector.load %arg2[%c0_19, %c0_20, %c0_21] : memref<2x4x256xf32, #tpu.memory_space<vmem>>, vector<1x4x256xf32>
    %15 = vector.shape_cast %14 : vector<1x4x256xf32> to vector<4x256xf32>
    %cst_22 = arith.constant dense<0.000000e+00> : vector<32x256xf32>
    %16 = tpu.matmul %2, %15, %cst_22 {dimension_numbers = #tpu.dot_dimension_numbers<[1], [0], [0], [1], [0, 0, 1, 1], [], []>} : vector<32x4xf32>, vector<4x256xf32>, vector<32x256xf32> -> vector<32x256xf32>
    %17 = arith.addf %13, %16 : vector<32x256xf32>
    %18 = vector.broadcast %3 : vector<32x1xf32> to vector<32x256xf32>
    %19 = arith.addf %17, %18 : vector<32x256xf32>
    %cst_23 = arith.constant 0.000000e+00 : f32
    %20 = vector.broadcast %cst_23 : f32 to vector<32x256xf32>
    %21 = arith.maximumf %19, %20 : vector<32x256xf32>
    %cst_24 = arith.constant dense<0.000000e+00> : vector<4x256xf32>
    %22 = tpu.matmul %4, %21, %cst_24 {dimension_numbers = #tpu.dot_dimension_numbers<[1], [0], [0], [1], [0, 0, 1, 1], [], []>} : vector<4x32xf32>, vector<32x256xf32>, vector<4x256xf32> -> vector<4x256xf32>
    %23 = vector.broadcast %5 : vector<4x1xf32> to vector<4x256xf32>
    %24 = arith.addf %22, %23 : vector<4x256xf32>
    %c0_25 = arith.constant 0 : index
    %c0_26 = arith.constant 0 : index
    %c0_27 = arith.constant 0 : index
    %25 = vector.load %arg2[%c0_25, %c0_26, %c0_27] : memref<2x4x256xf32, #tpu.memory_space<vmem>>, vector<1x4x256xf32>
    %26 = vector.shape_cast %25 : vector<1x4x256xf32> to vector<4x256xf32>
    %27 = arith.subf %24, %26 : vector<4x256xf32>
    %28 = arith.mulf %27, %27 : vector<4x256xf32>
    %29 = arith.addf %6, %28 : vector<4x256xf32>
    %c1 = arith.constant 1 : index
    %c0_28 = arith.constant 0 : index
    %c0_29 = arith.constant 0 : index
    %30 = vector.load %arg0[%c1, %c0_28, %c0_29] : memref<2x4x256xf32, #tpu.memory_space<vmem>>, vector<1x4x256xf32>
    %31 = vector.shape_cast %30 : vector<1x4x256xf32> to vector<4x256xf32>
    %cst_30 = arith.constant dense<0.000000e+00> : vector<32x256xf32>
    %32 = tpu.matmul %0, %31, %cst_30 {dimension_numbers = #tpu.dot_dimension_numbers<[1], [0], [0], [1], [0, 0, 1, 1], [], []>} : vector<32x4xf32>, vector<4x256xf32>, vector<32x256xf32> -> vector<32x256xf32>
    %c1_31 = arith.constant 1 : index
    %c0_32 = arith.constant 0 : index
    %c0_33 = arith.constant 0 : index
    %33 = vector.load %arg1[%c1_31, %c0_32, %c0_33] : memref<2x1x256xf32, #tpu.memory_space<vmem>>, vector<1x1x256xf32>
    %34 = vector.shape_cast %33 : vector<1x1x256xf32> to vector<1x256xf32>
    %cst_34 = arith.constant dense<0.000000e+00> : vector<32x256xf32>
    %35 = tpu.matmul %1, %34, %cst_34 {dimension_numbers = #tpu.dot_dimension_numbers<[1], [0], [0], [1], [0, 0, 1, 1], [], []>} : vector<32x1xf32>, vector<1x256xf32>, vector<32x256xf32> -> vector<32x256xf32>
    %36 = arith.addf %32, %35 : vector<32x256xf32>
    %c1_35 = arith.constant 1 : index
    %c0_36 = arith.constant 0 : index
    %c0_37 = arith.constant 0 : index
    %37 = vector.load %arg2[%c1_35, %c0_36, %c0_37] : memref<2x4x256xf32, #tpu.memory_space<vmem>>, vector<1x4x256xf32>
    %38 = vector.shape_cast %37 : vector<1x4x256xf32> to vector<4x256xf32>
    %cst_38 = arith.constant dense<0.000000e+00> : vector<32x256xf32>
    %39 = tpu.matmul %2, %38, %cst_38 {dimension_numbers = #tpu.dot_dimension_numbers<[1], [0], [0], [1], [0, 0, 1, 1], [], []>} : vector<32x4xf32>, vector<4x256xf32>, vector<32x256xf32> -> vector<32x256xf32>
    %40 = arith.addf %36, %39 : vector<32x256xf32>
    %41 = vector.broadcast %3 : vector<32x1xf32> to vector<32x256xf32>
    %42 = arith.addf %40, %41 : vector<32x256xf32>
    %cst_39 = arith.constant 0.000000e+00 : f32
    %43 = vector.broadcast %cst_39 : f32 to vector<32x256xf32>
    %44 = arith.maximumf %42, %43 : vector<32x256xf32>
    %cst_40 = arith.constant dense<0.000000e+00> : vector<4x256xf32>
    %45 = tpu.matmul %4, %44, %cst_40 {dimension_numbers = #tpu.dot_dimension_numbers<[1], [0], [0], [1], [0, 0, 1, 1], [], []>} : vector<4x32xf32>, vector<32x256xf32>, vector<4x256xf32> -> vector<4x256xf32>
    %46 = vector.broadcast %5 : vector<4x1xf32> to vector<4x256xf32>
    %47 = arith.addf %45, %46 : vector<4x256xf32>
    %c1_41 = arith.constant 1 : index
    %c0_42 = arith.constant 0 : index
    %c0_43 = arith.constant 0 : index
    %48 = vector.load %arg2[%c1_41, %c0_42, %c0_43] : memref<2x4x256xf32, #tpu.memory_space<vmem>>, vector<1x4x256xf32>
    %49 = vector.shape_cast %48 : vector<1x4x256xf32> to vector<4x256xf32>
    %50 = arith.subf %47, %49 : vector<4x256xf32>
    %51 = arith.mulf %50, %50 : vector<4x256xf32>
    %52 = arith.addf %29, %51 : vector<4x256xf32>
    %53 = vector.shape_cast %52 : vector<4x256xf32> to vector<1x4x256xf32>
    %cst_44 = arith.constant dense<0.000000e+00> : vector<1xf32>
    %54 = vector.multi_reduction <add>, %53, %cst_44 [1, 2] : vector<1x4x256xf32> to vector<1xf32>
    %55 = vector.shape_cast %54 : vector<1xf32> to vector<1x1x1xf32>
    %56 = vector.extract %55[0, 0, 0] : f32 from vector<1x1x1xf32>
    %cst_45 = arith.constant 0.000000e+00 : f32
    %57 = vector.broadcast %cst_45 : f32 to vector<4x64xf32>
    %c0_46 = arith.constant 0 : index
    %c0_47 = arith.constant 0 : index
    %c0_48 = arith.constant 0 : index
    %58 = vector.load %arg3[%c0_46, %c0_47, %c0_48] : memref<2x4x64xf32, #tpu.memory_space<vmem>>, vector<1x4x64xf32>
    %59 = vector.shape_cast %58 : vector<1x4x64xf32> to vector<4x64xf32>
    %cst_49 = arith.constant dense<0.000000e+00> : vector<32x64xf32>
    %60 = tpu.matmul %0, %59, %cst_49 {dimension_numbers = #tpu.dot_dimension_numbers<[1], [0], [0], [1], [0, 0, 1, 1], [], []>} : vector<32x4xf32>, vector<4x64xf32>, vector<32x64xf32> -> vector<32x64xf32>
    %c0_50 = arith.constant 0 : index
    %c0_51 = arith.constant 0 : index
    %c0_52 = arith.constant 0 : index
    %61 = vector.load %arg4[%c0_50, %c0_51, %c0_52] : memref<2x1x64xf32, #tpu.memory_space<vmem>>, vector<1x1x64xf32>
    %62 = vector.shape_cast %61 : vector<1x1x64xf32> to vector<1x64xf32>
    %cst_53 = arith.constant dense<0.000000e+00> : vector<32x64xf32>
    %63 = tpu.matmul %1, %62, %cst_53 {dimension_numbers = #tpu.dot_dimension_numbers<[1], [0], [0], [1], [0, 0, 1, 1], [], []>} : vector<32x1xf32>, vector<1x64xf32>, vector<32x64xf32> -> vector<32x64xf32>
    %64 = arith.addf %60, %63 : vector<32x64xf32>
    %c0_54 = arith.constant 0 : index
    %c0_55 = arith.constant 0 : index
    %c0_56 = arith.constant 0 : index
    %65 = vector.load %arg5[%c0_54, %c0_55, %c0_56] : memref<2x4x64xf32, #tpu.memory_space<vmem>>, vector<1x4x64xf32>
    %66 = vector.shape_cast %65 : vector<1x4x64xf32> to vector<4x64xf32>
    %cst_57 = arith.constant dense<0.000000e+00> : vector<32x64xf32>
    %67 = tpu.matmul %2, %66, %cst_57 {dimension_numbers = #tpu.dot_dimension_numbers<[1], [0], [0], [1], [0, 0, 1, 1], [], []>} : vector<32x4xf32>, vector<4x64xf32>, vector<32x64xf32> -> vector<32x64xf32>
    %68 = arith.addf %64, %67 : vector<32x64xf32>
    %69 = vector.broadcast %3 : vector<32x1xf32> to vector<32x64xf32>
    %70 = arith.addf %68, %69 : vector<32x64xf32>
    %cst_58 = arith.constant 0.000000e+00 : f32
    %71 = vector.broadcast %cst_58 : f32 to vector<32x64xf32>
    %72 = arith.maximumf %70, %71 : vector<32x64xf32>
    %cst_59 = arith.constant dense<0.000000e+00> : vector<4x64xf32>
    %73 = tpu.matmul %4, %72, %cst_59 {dimension_numbers = #tpu.dot_dimension_numbers<[1], [0], [0], [1], [0, 0, 1, 1], [], []>} : vector<4x32xf32>, vector<32x64xf32>, vector<4x64xf32> -> vector<4x64xf32>
    %74 = vector.broadcast %5 : vector<4x1xf32> to vector<4x64xf32>
    %75 = arith.addf %73, %74 : vector<4x64xf32>
    %c0_60 = arith.constant 0 : index
    %c0_61 = arith.constant 0 : index
    %c0_62 = arith.constant 0 : index
    %76 = vector.load %arg6[%c0_60, %c0_61, %c0_62] : memref<2x4x64xf32, #tpu.memory_space<vmem>>, vector<1x4x64xf32>
    %77 = vector.shape_cast %76 : vector<1x4x64xf32> to vector<4x64xf32>
    %78 = arith.subf %75, %77 : vector<4x64xf32>
    %79 = arith.mulf %78, %78 : vector<4x64xf32>
    %80 = arith.addf %57, %79 : vector<4x64xf32>
    %c1_63 = arith.constant 1 : index
    %c0_64 = arith.constant 0 : index
    %c0_65 = arith.constant 0 : index
    %81 = vector.load %arg3[%c1_63, %c0_64, %c0_65] : memref<2x4x64xf32, #tpu.memory_space<vmem>>, vector<1x4x64xf32>
    %82 = vector.shape_cast %81 : vector<1x4x64xf32> to vector<4x64xf32>
    %cst_66 = arith.constant dense<0.000000e+00> : vector<32x64xf32>
    %83 = tpu.matmul %0, %82, %cst_66 {dimension_numbers = #tpu.dot_dimension_numbers<[1], [0], [0], [1], [0, 0, 1, 1], [], []>} : vector<32x4xf32>, vector<4x64xf32>, vector<32x64xf32> -> vector<32x64xf32>
    %c1_67 = arith.constant 1 : index
    %c0_68 = arith.constant 0 : index
    %c0_69 = arith.constant 0 : index
    %84 = vector.load %arg4[%c1_67, %c0_68, %c0_69] : memref<2x1x64xf32, #tpu.memory_space<vmem>>, vector<1x1x64xf32>
    %85 = vector.shape_cast %84 : vector<1x1x64xf32> to vector<1x64xf32>
    %cst_70 = arith.constant dense<0.000000e+00> : vector<32x64xf32>
    %86 = tpu.matmul %1, %85, %cst_70 {dimension_numbers = #tpu.dot_dimension_numbers<[1], [0], [0], [1], [0, 0, 1, 1], [], []>} : vector<32x1xf32>, vector<1x64xf32>, vector<32x64xf32> -> vector<32x64xf32>
    %87 = arith.addf %83, %86 : vector<32x64xf32>
    %c1_71 = arith.constant 1 : index
    %c0_72 = arith.constant 0 : index
    %c0_73 = arith.constant 0 : index
    %88 = vector.load %arg5[%c1_71, %c0_72, %c0_73] : memref<2x4x64xf32, #tpu.memory_space<vmem>>, vector<1x4x64xf32>
    %89 = vector.shape_cast %88 : vector<1x4x64xf32> to vector<4x64xf32>
    %cst_74 = arith.constant dense<0.000000e+00> : vector<32x64xf32>
    %90 = tpu.matmul %2, %89, %cst_74 {dimension_numbers = #tpu.dot_dimension_numbers<[1], [0], [0], [1], [0, 0, 1, 1], [], []>} : vector<32x4xf32>, vector<4x64xf32>, vector<32x64xf32> -> vector<32x64xf32>
    %91 = arith.addf %87, %90 : vector<32x64xf32>
    %92 = vector.broadcast %3 : vector<32x1xf32> to vector<32x64xf32>
    %93 = arith.addf %91, %92 : vector<32x64xf32>
    %cst_75 = arith.constant 0.000000e+00 : f32
    %94 = vector.broadcast %cst_75 : f32 to vector<32x64xf32>
    %95 = arith.maximumf %93, %94 : vector<32x64xf32>
    %cst_76 = arith.constant dense<0.000000e+00> : vector<4x64xf32>
    %96 = tpu.matmul %4, %95, %cst_76 {dimension_numbers = #tpu.dot_dimension_numbers<[1], [0], [0], [1], [0, 0, 1, 1], [], []>} : vector<4x32xf32>, vector<32x64xf32>, vector<4x64xf32> -> vector<4x64xf32>
    %97 = vector.broadcast %5 : vector<4x1xf32> to vector<4x64xf32>
    %98 = arith.addf %96, %97 : vector<4x64xf32>
    %c1_77 = arith.constant 1 : index
    %c0_78 = arith.constant 0 : index
    %c0_79 = arith.constant 0 : index
    %99 = vector.load %arg6[%c1_77, %c0_78, %c0_79] : memref<2x4x64xf32, #tpu.memory_space<vmem>>, vector<1x4x64xf32>
    %100 = vector.shape_cast %99 : vector<1x4x64xf32> to vector<4x64xf32>
    %101 = arith.subf %98, %100 : vector<4x64xf32>
    %102 = arith.mulf %101, %101 : vector<4x64xf32>
    %103 = arith.addf %80, %102 : vector<4x64xf32>
    %104 = vector.shape_cast %103 : vector<4x64xf32> to vector<1x4x64xf32>
    %cst_80 = arith.constant dense<0.000000e+00> : vector<1xf32>
    %105 = vector.multi_reduction <add>, %104, %cst_80 [1, 2] : vector<1x4x64xf32> to vector<1xf32>
    %106 = vector.shape_cast %105 : vector<1xf32> to vector<1x1x1xf32>
    %107 = vector.extract %106[0, 0, 0] : f32 from vector<1x1x1xf32>
    %cst_81 = arith.constant 0.000000e+00 : f32
    %108 = vector.broadcast %cst_81 : f32 to vector<1x1xf32>
    %109 = vector.broadcast %56 : f32 to vector<1x1xf32>
    %110 = arith.addf %108, %109 : vector<1x1xf32>
    %c0_82 = arith.constant 0 : index
    %c0_83 = arith.constant 0 : index
    %111 = vector.load %arg13[%c0_82, %c0_83] : memref<1x1xf32, #tpu.memory_space<vmem>>, vector<1x1xf32>
    tpu.vector_store %arg13[%c0_82, %c0_83], %110 {strides = array<i32>} : memref<1x1xf32, #tpu.memory_space<vmem>>, vector<1x1xf32>,
    %cst_84 = arith.constant 0.000000e+00 : f32
    %112 = vector.broadcast %cst_84 : f32 to vector<1x1xf32>
    %113 = vector.broadcast %107 : f32 to vector<1x1xf32>
    %114 = arith.addf %112, %113 : vector<1x1xf32>
    %c0_85 = arith.constant 0 : index
    %c0_86 = arith.constant 0 : index
    %115 = vector.load %arg14[%c0_85, %c0_86] : memref<1x1xf32, #tpu.memory_space<vmem>>, vector<1x1xf32>
    tpu.vector_store %arg14[%c0_85, %c0_86], %114 {strides = array<i32>} : memref<1x1xf32, #tpu.memory_space<vmem>>, vector<1x1xf32>,
    return
  }
}

</mosaic_0001>

<bundles_post_ra>
// kernel: trainer_forward.1
= control target key start
LH: loop header
LB: loop body
LE: loop exit
PB: predicated region body
PF: predicated region fallthrough
CT: control target
= control target key end

     0   :  { %20 = vsyncpa [#allocation3], 0  ;;  %v69_v0 = vlaneseq  ;;  %v2027_v1 = vmov 0.0   ;;  %v2028_v5 = vmov 0   ;;  %vm90_vm0 = vcmask 1040384   ;;  %s2496_s0 = inlined_call_operand.vmem [shape: f32[2,4,256], index: 0, kind: input, shape index: {}]   ;;  %s2497_s1 = inlined_call_operand.vmem [shape: f32[2,1,256], index: 1, kind: input, shape index: {}]   ;;  %s2498_s2 = inlined_call_operand.vmem [shape: f32[2,4,256], index: 2, kind: input, shape index: {}]   ;;  %s2499_s3 = inlined_call_operand.vmem [shape: f32[2,4,64], index: 3, kind: input, shape index: {}]   ;;  %s2500_s4 = inlined_call_operand.vmem [shape: f32[2,1,64], index: 4, kind: input, shape index: {}]   ;;  %s2501_s5 = inlined_call_operand.vmem [shape: f32[2,4,64], index: 5, kind: input, shape index: {}]   ;;  %s2502_s6 = inlined_call_operand.vmem [shape: f32[2,4,64], index: 6, kind: input, shape index: {}]   ;;  %s2503_s7 = inlined_call_operand.vmem [shape: f32[32,4], index: 7, kind: input, shape index: {}]   ;;  %s2504_s8 = inlined_call_operand.vmem [shape: f32[32,1], index: 8, kind: input, shape index: {}]   ;;  %s2505_s9 = inlined_call_operand.vmem [shape: f32[32,4], index: 9, kind: input, shape index: {}]   ;;  %s2506_s10 = inlined_call_operand.vmem [shape: f32[32,1], index: 10, kind: input, shape index: {}]   ;;  %s2507_s11 = inlined_call_operand.vmem [shape: f32[4,32], index: 11, kind: input, shape index: {}]   ;;  %s2508_s12 = inlined_call_operand.vmem [shape: f32[4,1], index: 12, kind: input, shape index: {}]   ;;  %s2509_s13 = inlined_call_operand.hbm [shape: f32[1,1], index: 13, kind: output, shape index: {0}]   ;;  %s2510_s14 = inlined_call_operand.hbm [shape: f32[1,1], index: 14, kind: output, shape index: {1}]  }
   0x1   :  { %159 = vmatprep.mubr.f32.mxu0 %v2027_v1  ;;  %518 = vmatprep.mubr.f32.mxu1 %v2027_v1  ;;  %v67_v3 = vld [vmem:[%s2497_s1] sm:$0x3]  ;;  %v62_v13 = vld [vmem:[%s2506_s10 + $0x10] sm:$0xff]  ;;  %vm77_vm1 = vcmask 7168   ;;  %vm199_vm2 = vcmask 1043456  }
   0x2   :  { %v2110_v2 = vshrl.u32 %v69_v0, 7  ;;  %v66_v4 = vld [vmem:[%s2496_s0] sm:$0xff]  ;;  %1973 = vset.pattern.permute.xlu0 %v2028_v5  ;;  %1974 = vset.pattern.permute.xlu1 %v2028_v5 }
   0x3   :  { %v2123_v8 = vld [vmem:[%s2498_s2] sm:$0xff]  ;;  %v185_v12 = vcombine.high %v66_v4, %v66_v4  ;;  %421 = vperm.xlu1 %1974, %v62_v13  }
   0x4   :  { %v71_v6 = vsub.s32 0, %v2110_v2  ;;  %v75_v7 = vsub.s32 1, %v2110_v2  ;;  %v60_v9 = vld [vmem:[%s2506_s10] sm:$0xff] }
   0x5   :  { %411 = vperm.xlu0 %1973, %v60_v9   ;;  %v2138_v14 = vld [vmem:[%s2504_s8] sm:$0xff] }
   0x6   :  { %v72_v10 = vrot.slane %v67_v3, %v71_v6  ;;  %v76_v11 = vrot.slane %v67_v3, %v75_v7 }
   0x7   :  { %21 = vsyncpa [#allocation5], 0  ;;  %v2143_v15 = vcombine.high %v2123_v8, %v2123_v8  ;;  %v61_v16 = vld [vmem:[%s2506_s10 + $0x8] sm:$0xff]  ;;  %v63_v17 = vld [vmem:[%s2506_s10 + $0x18] sm:$0xff]  ;;  %vm186_vm3 = vcmask 31744   ;;  %vm450_vm4 = vcmask 261120  }
   0x8   :  { %1700 = vmatprep.subr.msk.mxu0 %vm90_vm0, %v76_v11  ;;  %v2159_v18 = vld [vmem:[%s2504_s8 + $0x8] sm:$0xff]  ;;  %v65_v19 = vld [vmem:[%s2508_s12] sm:$0xf]  ;;  %426 = vperm.xlu1 %1974, %v63_v17   ;;  %v2173_v20 = vld [vmem:[%s2504_s8 + $0x10] sm:$0xff]  ;;  %vm2030_vm5 = vmmov 0   ;;  %vm1667_vm6 = vcmask 0  }
   0x9   :  { %1701 = vmatpush1.msk.msra.mxu0 %vm90_vm0, %v72_v10  ;;  %416 = vperm.xlu0 %1973, %v61_v16   ;;  %v2181_v21 = vld [vmem:[%s2504_s8 + $0x18] sm:$0xff]  ;;  %v2189_v22 = vld [vmem:[%s2503_s7] sm:$0xff]  ;;  %v2197_v23 = vld [vmem:[%s2503_s7 + $0x8] sm:$0xff]  ;;  %vm1654_vm7 = vcmask 519168   ;;  %s2031_s30 = smov [#allocation2]  }
   0xa   :  { %1702 = vmatmul.mubr.msk.f32.vlgmr.msra.gmra.mrb[0].mxu0 %vm77_vm1, %v2138_v14  ;;  %1706 = vmatprep.subr.msk.mxu0 %vm199_vm2, %v185_v12  ;;  %v2207_v24 = vld [vmem:[%s2503_s7 + $0x10] sm:$0xff]  ;;  %v2215_v25 = vld [vmem:[%s2503_s7 + $0x18] sm:$0xff]  ;;  %v2223_v26 = vld [vmem:[%s2505_s9] sm:$0xff]  ;;  %s1678_s15 = sshll.u32 %s2031_s30, 4  ;;  %s1679_s15 = int_to_ptr.vmem [resolvable:$true] %s1678_s15 }
   0xb   :  { %165 = vmatprep.mubr.f32.mxu0 %v2027_v1  ;;  %1707 = vmatpush1.msk.msra.mxu0 %vm199_vm2, %v66_v4  ;;  %v2231_v27 = vld [vmem:[%s2505_s9 + $0x8] sm:$0xff]  ;;  %v2239_v28 = vld [vmem:[%s2505_s9 + $0x10] sm:$0xff]  ;;  %v2247_v29 = vld [vmem:[%s2505_s9 + $0x18] sm:$0xff]  ;;  %s1979_s16 = scalar_lea.vmem %s1679_s15, 16  ;;  %s1983_s9 = scalar_lea.vmem %s1679_s15, 32 }
   0xc   :  { %1712 = vmatprep.subr.msk.mxu0 %vm199_vm2, %v2143_v15  ;;  %v1720_v56 = vld [vmem:[%s2497_s1 + $0x2] sm:$0x3]  ;;  %v1719_v0 = vld [vmem:[%s2496_s0 + $0x8] sm:$0xff]  ;;  %p1980_p0 = scmp.ne.s32.totalorder %s1679_s15, %s1979_s16  ;;  %p1984_p1 = scmp.lt.s32.totalorder %s1679_s15, %s1679_s15 }
   0xd   :  { %447 = vperm.xlu0 %1973, %v65_v19   ;;  %v544_v62 = vrot.slane %v1720_v56, %v75_v7  ;;  %v540_v3 = vrot.slane %v1720_v56, %v71_v6  ;;  %v2281_v4 = vld [vmem:[%s2507_s11] sm:$0xf]  ;;  %v639_v5 = vcombine.high %v1719_v0, %v1719_v0  ;;  %v2287_v7 = vld [vmem:[%s2498_s2 + $0x8] sm:$0xff]  ;;  %p1985_p2 = scmp.lt.s32.totalorder %s1983_s9, %s1979_s16 }
   0xe   :  { %1703 = vmatmul.mubr.msk.f32.gmra.mrb[2].mxu0 %vm77_vm1, %v2159_v18  ;;  %v2296_v2 = vcombine.high %v2287_v7, %v2287_v7  ;;  %v944_v56 = vld [vmem:[%s2499_s3] sm:$0xf] }
   0xf   :  { %171 = vmatprep.mubr.f32.mxu0 %v2027_v1  ;;  %p1986_p3 = por %p1985_p2, %p1984_p1 }
  0x11   :  { %p1987_p4 = pnand %p1986_p3, %p1980_p0 }
  0x12   :  { %1704 = vmatmul.mubr.msk.f32.gmra.mrb[4].mxu0 %vm77_vm1, %v2173_v20 }
  0x13   :  { %177 = vmatprep.mubr.f32.mxu0 %v2027_v1 }
  0x16   :  { %1705 = vmatmul.mubr.msk.f32.gmra.mrb[6].mxu0 %vm77_vm1, %v2181_v21 }
  0x17   :  { %268 = vmatprep.mubr.f32.mxu0 %v2027_v1 }
  0x1a   :  { %1708 = vmatmul.mubr.msk.f32.vlgmr.msra.gmra.mrb[0].mxu0 %vm186_vm3, %v2189_v22 }
  0x1b   :  { %274 = vmatprep.mubr.f32.mxu0 %v2027_v1  ;;  %1713 = vmatpush1.msk.msra.mxu0 %vm199_vm2, %v2123_v8 }
  0x1e   :  { %1709 = vmatmul.mubr.msk.f32.gmra.mrb[2].mxu0 %vm186_vm3, %v2197_v23 }
  0x1f   :  { %280 = vmatprep.mubr.f32.mxu0 %v2027_v1 }
  0x22   :  { %1710 = vmatmul.mubr.msk.f32.gmra.mrb[4].mxu0 %vm186_vm3, %v2207_v24 }
  0x23   :  { %286 = vmatprep.mubr.f32.mxu0 %v2027_v1 }
  0x26   :  { %1711 = vmatmul.mubr.msk.f32.gmra.mrb[6].mxu0 %vm186_vm3, %v2215_v25 }
  0x27   :  { %376 = vmatprep.mubr.f32.mxu0 %v2027_v1 }
  0x2a   :  { %1714 = vmatmul.mubr.msk.f32.vlgmr.msra.gmra.mrb[0].mxu0 %vm186_vm3, %v2223_v26 }
  0x2b   :  { %382 = vmatprep.mubr.f32.mxu0 %v2027_v1 }
  0x2e   :  { %1715 = vmatmul.mubr.msk.f32.gmra.mrb[2].mxu0 %vm186_vm3, %v2231_v27 }
  0x2f   :  { %388 = vmatprep.mubr.f32.mxu0 %v2027_v1 }
  0x32   :  { %1716 = vmatmul.mubr.msk.f32.gmra.mrb[4].mxu0 %vm186_vm3, %v2239_v28 }
  0x33   :  { %394 = vmatprep.mubr.f32.mxu0 %v2027_v1 }
  0x36   :  { %1717 = vmatmul.mubr.msk.f32.gmra.mrb[6].mxu0 %vm186_vm3, %v2247_v29 }
  0x37   :  { %918 = vmatprep.mubr.f32.mxu0 %v2027_v1 }
  0x82   :  { %v2259_v39 = vpop.permute.xlu1 %421 }
  0x84   :  { %v2252_v30 = vpop.permute.xlu0 %411 }
  0x87   :  { %v2263_v50 = vpop.permute.xlu1 %426 }
  0x88   :  { %v2255_v34 = vpop.permute.xlu0 %416 }
  0xfd   :  { %v378_v31 = vpop.f32.mrb[0].mxu0 }
  0xfe   :  { %v380_v32 = vpop.f32.mrb[1].mxu0  ;;  %v429_v33 = vadd.f32 %v2252_v30, %v378_v31 }
  0xff   :  { %v430_v35 = vadd.f32 %v2252_v30, %v380_v32 }
 0x100   :  { %v437_v41 = vmax.f32 %v429_v33, 0.0 }
 0x101   :  { %v384_v36 = vpop.f32.mrb[2].mxu0  ;;  %v438_v43 = vmax.f32 %v430_v35, 0.0 }
 0x102   :  { %v431_v37 = vadd.f32 %v2255_v34, %v384_v36  ;;  %v386_v38 = vpop.f32.mrb[3].mxu0 }
 0x103   :  { %v432_v40 = vadd.f32 %v2255_v34, %v386_v38 }
 0x104   :  { %v439_v42 = vmax.f32 %v431_v37, 0.0 }
 0x105   :  { %v440_v44 = vmax.f32 %v432_v40, 0.0  ;;  %v390_v45 = vpop.f32.mrb[4].mxu0 }
 0x106   :  { %v392_v46 = vpop.f32.mrb[5].mxu0  ;;  %v1889_v47 = vpack.c.bf16 %v439_v42, %v437_v41  ;;  %v433_v49 = vadd.f32 %v2259_v39, %v390_v45 }
 0x107   :  { %v1887_v48 = vpack.c.bf16 %v440_v44, %v438_v43  ;;  %v434_v51 = vadd.f32 %v2259_v39, %v392_v46 }
 0x108   :  { %v441_v57 = vmax.f32 %v433_v49, 0.0 }
 0x109   :  { %v396_v52 = vpop.f32.mrb[6].mxu0  ;;  %1888 = vmatprep.subr.bf16.mxu1 %v1887_v48  ;;  %v442_v59 = vmax.f32 %v434_v51, 0.0 }
 0x10a   :  { %v435_v53 = vadd.f32 %v2263_v50, %v396_v52  ;;  %v398_v54 = vpop.f32.mrb[7].mxu0  ;;  %1890 = vmatpush1.bf16.msra.mxu1 %v1889_v47 }
 0x10b   :  { %v436_v55 = vadd.f32 %v2263_v50, %v398_v54 }
 0x10c   :  { %v443_v58 = vmax.f32 %v435_v53, 0.0 }
 0x10d   :  { %v444_v60 = vmax.f32 %v436_v55, 0.0  ;;  %v945_v55 = vld [vmem:[%s2500_s4] sm:$0x1] }
 0x10e   :  { %v1893_v61 = vpack.c.bf16 %v443_v58, %v441_v57  ;;  %v1122_v57 = vld [vmem:[%s2501_s5] sm:$0xf]  ;;  %v2029_v58 = vmov 0.0|0.0  }
 0x10f   :  { %v1891_v63 = vpack.c.bf16 %v444_v60, %v442_v59  ;;  %v2395_v59 = vpop.permute.xlu0 %447 }
 0x111   :  { %1892 = vmatprep.subr.bf16.mxu1 %v1891_v63 }
 0x112   :  { %1894 = vmatpush1.bf16.msra.mxu1 %v1893_v61 }
 0x113   :  { %1721 = vmatprep.subr.msk.mxu1 %vm90_vm0, %v544_v62 }
 0x115   :  { %1718 = vmatmul.mubr.msk.f32.vlgmr.msra.gmra.mrb[0].mxu1 %vm450_vm4, %v2281_v4 }
 0x116   :  { %1722 = vmatpush1.msk.msra.mxu1 %vm90_vm0, %v540_v3  ;;  %613 = vmatprep.mubr.f32.mxu1 %v2027_v1 }
 0x117   :  { %1727 = vmatprep.subr.msk.mxu1 %vm199_vm2, %v639_v5 }
 0x119   :  { %1723 = vmatmul.mubr.msk.f32.vlgmr.msra.gmra.mrb[2].mxu1 %vm77_vm1, %v2138_v14 }
 0x11a   :  { %619 = vmatprep.mubr.f32.mxu1 %v2027_v1  ;;  %1728 = vmatpush1.msk.msra.mxu1 %vm199_vm2, %v1719_v0 }
 0x11b   :  { %1734 = vmatprep.subr.msk.mxu1 %vm199_vm2, %v2296_v2 }
 0x11d   :  { %1724 = vmatmul.mubr.msk.f32.gmra.mrb[4].mxu1 %vm77_vm1, %v2159_v18 }
 0x11e   :  { %625 = vmatprep.mubr.f32.mxu1 %v2027_v1 }
 0x121   :  { %1725 = vmatmul.mubr.msk.f32.gmra.mrb[6].mxu1 %vm77_vm1, %v2173_v20 }
 0x122   :  { %631 = vmatprep.mubr.f32.mxu1 %v2027_v1 }
 0x125   :  { %1726 = vmatmul.mubr.msk.f32.gmra.mrb[8].mxu1 %vm77_vm1, %v2181_v21 }
 0x126   :  { %708 = vmatprep.mubr.f32.mxu1 %v2027_v1 }
 0x129   :  { %1729 = vmatmul.mubr.msk.f32.vlgmr.msra.gmra.mrb[2].mxu1 %vm186_vm3, %v2189_v22 }
 0x12a   :  { %714 = vmatprep.mubr.f32.mxu1 %v2027_v1  ;;  %1735 = vmatpush1.msk.msra.mxu1 %vm199_vm2, %v2287_v7 }
 0x12b   :  { %1903 = vmatprep.subr.bf16.mxu1 %v2029_v58 }
 0x12d   :  { %1730 = vmatmul.mubr.msk.f32.gmra.mrb[4].mxu1 %vm186_vm3, %v2197_v23 }
 0x12e   :  { %720 = vmatprep.mubr.f32.mxu1 %v2027_v1 }
 0x131   :  { %1731 = vmatmul.mubr.msk.f32.gmra.mrb[6].mxu1 %vm186_vm3, %v2207_v24 }
 0x132   :  { %726 = vmatprep.mubr.f32.mxu1 %v2027_v1 }
 0x135   :  { %1732 = vmatmul.mubr.msk.f32.gmra.mrb[8].mxu1 %vm186_vm3, %v2215_v25 }
 0x136   :  { %805 = vmatprep.mubr.f32.mxu1 %v2027_v1 }
 0x139   :  { %1736 = vmatmul.mubr.msk.f32.vlgmr.msra.gmra.mrb[2].mxu1 %vm186_vm3, %v2223_v26 }
 0x13a   :  { %811 = vmatprep.mubr.f32.mxu1 %v2027_v1 }
 0x13d   :  { %1737 = vmatmul.mubr.msk.f32.gmra.mrb[4].mxu1 %vm186_vm3, %v2231_v27 }
 0x13e   :  { %817 = vmatprep.mubr.f32.mxu1 %v2027_v1 }
 0x141   :  { %1738 = vmatmul.mubr.msk.f32.gmra.mrb[6].mxu1 %vm186_vm3, %v2239_v28 }
 0x142   :  { %823 = vmatprep.mubr.f32.mxu1 %v2027_v1 }
 0x145   :  { %1739 = vmatmul.mubr.msk.f32.gmra.mrb[8].mxu1 %vm186_vm3, %v2247_v29 }
 0x146   :  { %1849 = vmatprep.mubr.msk.f32.mxu1 %vm2030_vm5, %v2027_v1 }
 0x1e8   :  { %v2338_v6 = vpop.f32.mrb[0].mxu1 }
 0x1e9   :  { %v2340_v9 = vpop.f32.mrb[1].mxu1  ;;  %v521_v60 = vadd.f32 %v2338_v6, %v2395_v59 }
 0x1ea   :  { %v523_v61 = vadd.f32 %v2340_v9, %v2395_v59 }
 0x1eb   :  { %v526_v63 = vsub.f32 %v521_v60, %v2123_v8 }
 0x1ec   :  { %v527_v5 = vsub.f32 %v523_v61, %v2143_v15 }
 0x1ee   :  { %v529_v6 = vmul.f32 %v527_v5, %v527_v5 }
 0x20c   :  { %v807_v10 = vpop.f32.mrb[2].mxu1 }
 0x20d   :  { %v809_v11 = vpop.f32.mrb[3].mxu1  ;;  %v838_v12 = vadd.f32 %v807_v10, %v2252_v30 }
 0x20e   :  { %v839_v13 = vadd.f32 %v809_v11, %v2252_v30 }
 0x20f   :  { %v846_v32 = vmax.f32 %v838_v12, 0.0  ;;  %v528_v12 = vmul.f32 %v526_v63, %v526_v63 }
 0x210   :  { %v813_v16 = vpop.f32.mrb[4].mxu1  ;;  %v847_v35 = vmax.f32 %v839_v13, 0.0 }
 0x211   :  { %v840_v17 = vadd.f32 %v813_v16, %v2255_v34  ;;  %v815_v19 = vpop.f32.mrb[5].mxu1 }
 0x212   :  { %v841_v31 = vadd.f32 %v815_v19, %v2255_v34 }
 0x213   :  { %v848_v33 = vmax.f32 %v840_v17, 0.0 }
 0x214   :  { %v849_v36 = vmax.f32 %v841_v31, 0.0  ;;  %v819_v37 = vpop.f32.mrb[6].mxu1 }
 0x215   :  { %v1897_v38 = vpack.c.bf16 %v848_v33, %v846_v32  ;;  %v821_v40 = vpop.f32.mrb[7].mxu1  ;;  %v842_v42 = vadd.f32 %v819_v37, %v2259_v39 }
 0x216   :  { %v1895_v41 = vpack.c.bf16 %v849_v36, %v847_v35  ;;  %v843_v43 = vadd.f32 %v821_v40, %v2259_v39 }
 0x217   :  { %v850_v48 = vmax.f32 %v842_v42, 0.0 }
 0x218   :  { %v825_v44 = vpop.f32.mrb[8].mxu1  ;;  %1896 = vmatprep.subr.bf16.mxu0 %v1895_v41  ;;  %v851_v51 = vmax.f32 %v843_v43, 0.0 }
 0x219   :  { %v844_v45 = vadd.f32 %v825_v44, %v2263_v50  ;;  %v827_v46 = vpop.f32.mrb[9].mxu1  ;;  %1898 = vmatpush1.bf16.msra.mxu0 %v1897_v38 }
 0x21a   :  { %v845_v47 = vadd.f32 %v827_v46, %v2263_v50  ;;  %v1757_v46 = vld [vmem:[%s2499_s3 + $0x4] sm:$0xf] }
 0x21b   :  { %v852_v49 = vmax.f32 %v844_v45, 0.0  ;;  %v1758_v45 = vld [vmem:[%s2500_s4 + $0x1] sm:$0x1] }
 0x21c   :  { %v853_v52 = vmax.f32 %v845_v47, 0.0  ;;  %v1769_v47 = vld [vmem:[%s2501_s5 + $0x4] sm:$0xf] }
 0x21d   :  { %v1901_v53 = vpack.c.bf16 %v852_v49, %v850_v48 }
 0x21e   :  { %v1899_v54 = vpack.c.bf16 %v853_v52, %v851_v51 }
 0x220   :  { %1900 = vmatprep.subr.bf16.mxu0 %v1899_v54 }
 0x221   :  { %1902 = vmatpush1.bf16.msra.mxu0 %v1901_v53 }
 0x222   :  { %1817 = vmatprep.subr.msk.mxu0 %vm90_vm0, %v945_v55 }
 0x224   :  { %1740 = vmatmul.mubr.msk.f32.vlgmr.msra.gmra.mrb[8].mxu0 %vm450_vm4, %v2281_v4 }
 0x225   :  { %1818 = vmatpush3.msk.msra.mxu0 %vm90_vm0, %v945_v55  ;;  %1819 = vmatprep.mubr.msk.f32.mxu0 %vm77_vm1, %v2138_v14 }
 0x226   :  { %1825 = vmatprep.subr.msk.mxu0 %vm199_vm2, %v944_v56 }
 0x228   :  { %1820 = vmatmul.mubr.msk.f32.vlgmr.msra.gmra.mrb[10].mxu0 %vm77_vm1, %v2159_v18 }
 0x229   :  { %1822 = vmatprep.mubr.msk.f32.mxu0 %vm77_vm1, %v2173_v20  ;;  %1826 = vmatpush3.msk.msra.mxu0 %vm199_vm2, %v944_v56 }
 0x22a   :  { %1833 = vmatprep.subr.msk.mxu0 %vm199_vm2, %v1122_v57 }
 0x22c   :  { %1823 = vmatmul.mubr.msk.f32.gmra.mrb[12].mxu0 %vm77_vm1, %v2181_v21 }
 0x22d   :  { %1827 = vmatprep.mubr.msk.f32.mxu0 %vm186_vm3, %v2189_v22 }
 0x230   :  { %1828 = vmatmul.mubr.msk.f32.vlgmr.msra.gmra.mrb[10].mxu0 %vm186_vm3, %v2197_v23 }
 0x231   :  { %1830 = vmatprep.mubr.msk.f32.mxu0 %vm186_vm3, %v2207_v24  ;;  %1834 = vmatpush3.msk.msra.mxu0 %vm199_vm2, %v1122_v57 }
 0x232   :  { %1909 = vmatprep.subr.bf16.mxu0 %v2029_v58 }
 0x234   :  { %1831 = vmatmul.mubr.msk.f32.gmra.mrb[12].mxu0 %vm186_vm3, %v2215_v25 }
 0x235   :  { %1835 = vmatprep.mubr.msk.f32.mxu0 %vm186_vm3, %v2223_v26 }
 0x238   :  { %1836 = vmatmul.mubr.msk.f32.vlgmr.msra.gmra.mrb[10].mxu0 %vm186_vm3, %v2231_v27 }
 0x239   :  { %1838 = vmatprep.mubr.msk.f32.mxu0 %vm186_vm3, %v2239_v28 }
 0x23c   :  { %1839 = vmatmul.mubr.msk.f32.gmra.mrb[12].mxu0 %vm186_vm3, %v2247_v29 }
 0x23d   :  { %1884 = vmatprep.mubr.msk.f32.mxu0 %vm2030_vm5, %v2027_v1 }
 0x2f7   :  { %v920_v62 = vpop.f32.mrb[8].mxu0 }
 0x2f8   :  { %v921_v0 = vadd.f32 %v920_v62, %v2395_v59  ;;  %v922_v3 = vpop.f32.mrb[9].mxu0 }
 0x2f9   :  { %v923_v10 = vadd.f32 %v922_v3, %v2395_v59 }
 0x2fa   :  { %v926_v1 = vsub.f32 %v921_v0, %v2287_v7 }
 0x2fb   :  { %v927_v11 = vsub.f32 %v923_v10, %v2296_v2 }
 0x2fc   :  { %v928_v13 = vmul.f32 %v926_v1, %v926_v1 }
 0x2fd   :  { %v929_v16 = vmul.f32 %v927_v11, %v927_v11 }
 0x2fe   :  { %v930_v17 = vadd.f32 %v928_v13, %v528_v12 }
 0x2ff   :  { %v931_v9 = vadd.f32 %v929_v16, %v529_v6 }
 0x300   :  { %v932_v19 = vsel %vm199_vm2, %v930_v17, 0.0 }
 0x301   :  { %v933_v8 = vsel %vm199_vm2, %v931_v9, 0.0 }
 0x302   :  { %v934_v31 = vadd.f32 %v933_v8, %v932_v19 }
 0x304   :  { %935 = vadd.xlane.f32.xlu1 %v934_v31 }
 0x30b   :  { %v1837_v32 = vpop.f32.mrb[10].mxu0 }
 0x30c   :  { %v1216_v15 = vadd.f32 %v1837_v32, %v2255_v34  ;;  %v1192_v33 = vpop.f32.mrb[11].mxu0 }
 0x30d   :  { %v1215_v7 = vadd.f32 %v1192_v33, %v2252_v30 }
 0x30e   :  { %v1220_v35 = vmax.f32 %v1216_v15, 0.0 }
 0x30f   :  { %v1219_v2 = vmax.f32 %v1215_v7, 0.0  ;;  %v1840_v36 = vpop.f32.mrb[12].mxu0 }
 0x310   :  { %v1218_v37 = vadd.f32 %v1840_v36, %v2263_v50  ;;  %v1202_v38 = vpop.f32.mrb[13].mxu0 }
 0x311   :  { %v1904_v40 = vpack.c.bf16 %v1220_v35, %v1219_v2  ;;  %v1217_v41 = vadd.f32 %v1202_v38, %v2259_v39 }
 0x312   :  { %v1222_v42 = vmax.f32 %v1218_v37, 0.0 }
 0x313   :  { %v1221_v43 = vmax.f32 %v1217_v41, 0.0  ;;  %1905 = vmatpush3.bf16.msra.mxu1 %v1904_v40 }
 0x314   :  { %1906 = vmatprep.subr.bf16.mxu1 %v2029_v58 }
 0x315   :  { %v1907_v44 = vpack.c.bf16 %v1222_v42, %v1221_v43 }
 0x317   :  { %1908 = vmatpush3.bf16.msra.mxu1 %v1907_v44 }
 0x318   :  { %1852 = vmatprep.subr.msk.mxu1 %vm90_vm0, %v1758_v45 }
 0x31a   :  { %1850 = vmatmul.mubr.msk.f32.vlgmr.msra.gmra.mrb[10].mxu1 %vm450_vm4, %v2281_v4 }
 0x31b   :  { %1853 = vmatpush3.msk.msra.mxu1 %vm90_vm0, %v1758_v45  ;;  %1854 = vmatprep.mubr.msk.f32.mxu1 %vm77_vm1, %v2138_v14 }
 0x31c   :  { %1860 = vmatprep.subr.msk.mxu1 %vm199_vm2, %v1757_v46 }
 0x31e   :  { %1855 = vmatmul.mubr.msk.f32.vlgmr.msra.gmra.mrb[12].mxu1 %vm77_vm1, %v2159_v18 }
 0x31f   :  { %1857 = vmatprep.mubr.msk.f32.mxu1 %vm77_vm1, %v2173_v20  ;;  %1861 = vmatpush3.msk.msra.mxu1 %vm199_vm2, %v1757_v46 }
 0x320   :  { %1868 = vmatprep.subr.msk.mxu1 %vm199_vm2, %v1769_v47 }
 0x322   :  { %1858 = vmatmul.mubr.msk.f32.gmra.mrb[14].mxu1 %vm77_vm1, %v2181_v21 }
 0x323   :  { %1862 = vmatprep.mubr.msk.f32.mxu1 %vm186_vm3, %v2189_v22 }
 0x326   :  { %1863 = vmatmul.mubr.msk.f32.vlgmr.msra.gmra.mrb[12].mxu1 %vm186_vm3, %v2197_v23 }
 0x327   :  { %1865 = vmatprep.mubr.msk.f32.mxu1 %vm186_vm3, %v2207_v24  ;;  %1869 = vmatpush3.msk.msra.mxu1 %vm199_vm2, %v1769_v47 }
 0x32a   :  { %1866 = vmatmul.mubr.msk.f32.gmra.mrb[14].mxu1 %vm186_vm3, %v2215_v25 }
 0x32b   :  { %1870 = vmatprep.mubr.msk.f32.mxu1 %vm186_vm3, %v2223_v26 }
 0x32e   :  { %1871 = vmatmul.mubr.msk.f32.vlgmr.msra.gmra.mrb[12].mxu1 %vm186_vm3, %v2231_v27 }
 0x32f   :  { %1873 = vmatprep.mubr.msk.f32.mxu1 %vm186_vm3, %v2239_v28 }
 0x332   :  { %1874 = vmatmul.mubr.msk.f32.gmra.mrb[14].mxu1 %vm186_vm3, %v2247_v29 }
 0x391   :  { %v936_v14 = vpop.xlane.xlu1 %935 }
 0x392   :  { %v937_v18 = vrot.slane %v936_v14, 4 }
 0x394   :  { %v938_v20 = vadd.f32 %v937_v18, %v936_v14 }
 0x396   :  { %v939_v21 = vrot.slane %v938_v20, 2 }
 0x398   :  { %v940_v22 = vadd.f32 %v939_v21, %v938_v20 }
 0x39a   :  { %v941_v23 = vrot.slane %v940_v22, 1 }
 0x39c   :  { %v942_v24 = vadd.f32 %v941_v23, %v940_v22 }
 0x39e   :  { %1963 = vpush %v942_v24 }
 0x3cf   :  { %s1964_s3 = spop %1963 }
 0x3d0   :  { %v1665_v25 = vstv %s1964_s3 }
 0x3d1   :  { %1668 = vst.msk [vmem:[#allocation2] sm:$0x1] %vm1667_vm6, %v1665_v25 }
 0x3ed   :  { %v1289_v26 = vpop.f32.mrb[10].mxu1 }
 0x3ee   :  { %v1851_v27 = vpop.f32.mrb[11].mxu1 }
 0x401   :  { %v1872_v48 = vpop.f32.mrb[12].mxu1 }
 0x402   :  { %v1572_v28 = vadd.f32 %v1872_v48, %v2255_v34  ;;  %v1548_v49 = vpop.f32.mrb[13].mxu1  ;;  %v1293_v34 = vld [vmem:[%s2502_s6] sm:$0xf] }
 0x403   :  { %v1571_v29 = vadd.f32 %v1548_v49, %v2252_v30  ;;  %v1290_v30 = vadd.f32 %v1289_v26, %v2395_v59 }
 0x404   :  { %v1576_v51 = vmax.f32 %v1572_v28, 0.0 }
 0x405   :  { %v1575_v52 = vmax.f32 %v1571_v29, 0.0  ;;  %v1875_v53 = vpop.f32.mrb[14].mxu1  ;;  %v1294_v63 = vsub.f32 %v1290_v30, %v1293_v34 }
 0x406   :  { %v1574_v54 = vadd.f32 %v1875_v53, %v2263_v50  ;;  %v1558_v55 = vpop.f32.mrb[15].mxu1 }
 0x407   :  { %v1910_v56 = vpack.c.bf16 %v1576_v51, %v1575_v52  ;;  %v1573_v57 = vadd.f32 %v1558_v55, %v2259_v39  ;;  %v1776_v39 = vld [vmem:[%s2502_s6 + $0x4] sm:$0xf]  ;;  %v1295_v5 = vmul.f32 %v1294_v63, %v1294_v63 }
 0x408   :  { %v1578_v60 = vmax.f32 %v1574_v54, 0.0 }
 0x409   :  { %v1577_v61 = vmax.f32 %v1573_v57, 0.0  ;;  %1911 = vmatpush3.bf16.msra.mxu0 %v1910_v56 }
 0x40a   :  { %1912 = vmatprep.subr.bf16.mxu0 %v2029_v58 }
 0x40b   :  { %v1913_v62 = vpack.c.bf16 %v1578_v60, %v1577_v61 }
 0x40d   :  { %1914 = vmatpush3.bf16.msra.mxu0 %v1913_v62 }
 0x410   :  { %1885 = vmatmul.mubr.msk.f32.vlgmr.msra.gmra.mrb[14].mxu0 %vm450_vm4, %v2281_v4 }
 0x4e3   :  { %v1645_v50 = vpop.f32.mrb[14].mxu0 }
 0x4e4   :  { %v1646_v0 = vadd.f32 %v1645_v50, %v2395_v59  ;;  %v1886_v58 = vpop.f32.mrb[15].mxu0 }
 0x4e6   :  { %v1651_v3 = vsub.f32 %v1646_v0, %v1776_v39 }
 0x4e8   :  { %v1652_v10 = vmul.f32 %v1651_v3, %v1651_v3 }
 0x4ea   :  { %v1653_v4 = vadd.f32 %v1652_v10, %v1295_v5 }
 0x4ec   :  { %v1655_v1 = vsel %vm1654_vm7, %v1653_v4, 0.0 }
 0x4ed   :  { %1656 = vadd.xlane.f32.xlu0 %v1655_v1 }
 0x4ee   :  { %1990 = shalt.err (!%p1987_p4)
}
 0x4ef   :  { %s1991_s17 = scalar_lea.hbm %s2509_s13, 16 }
 0x4f0   :  { %p1992_p5 = scmp.ne.s32.totalorder %s2509_s13, %s1991_s17  ;;  %p1995_p6 = scmp.lt.u32.totalorder %s1991_s17, %s2509_s13 }
 0x4f2   :  { %p1997_p7 = pnand %p1995_p6, %p1992_p5 }
 0x4f4   :  { %2000 = shalt.err (!%p1997_p7)
}
 0x4f5   :  { %1681 = dma.vmem_to_hbm [thread:$0]  %s1679_s15, 16, %s2509_s13, [#allocation3]  }
 0x4f6   :  { %s2032_s2 = smov [#allocation4]  }
 0x4f7   :  { %s1688_s11 = sshll.u32 %s2032_s2, 4  ;;  %s1689_s11 = int_to_ptr.vmem [resolvable:$true] %s1688_s11 }
 0x4f8   :  { %s2001_s22 = scalar_lea.vmem %s1689_s11, 16  ;;  %s2005_s8 = scalar_lea.vmem %s1689_s11, 32 }
 0x4f9   :  { %p2002_p8 = scmp.ne.s32.totalorder %s1689_s11, %s2001_s22  ;;  %p2006_p9 = scmp.lt.s32.totalorder %s1689_s11, %s1689_s11 }
 0x4fa   :  { %p2007_p10 = scmp.lt.s32.totalorder %s2005_s8, %s2001_s22 }
 0x4fc   :  { %p2008_p11 = por %p2007_p10, %p2006_p9 }
 0x4fe   :  { %p2009_p12 = pnand %p2008_p11, %p2002_p8 }
 0x57a   :  { %v1657_v59 = vpop.xlane.xlu0 %1656 }
 0x57b   :  { %v1658_v11 = vrot.slane %v1657_v59, 4 }
 0x57d   :  { %v1659_v12 = vadd.f32 %v1658_v11, %v1657_v59 }
 0x57f   :  { %v1660_v13 = vrot.slane %v1659_v12, 2 }
 0x581   :  { %v1661_v6 = vadd.f32 %v1660_v13, %v1659_v12 }
 0x583   :  { %v1662_v16 = vrot.slane %v1661_v6, 1 }
 0x585   :  { %v1663_v17 = vadd.f32 %v1662_v16, %v1661_v6 }
 0x587   :  { %1965 = vpush %v1663_v17 }
 0x5b8   :  { %s1966_s21 = spop %1965 }
 0x5b9   :  { %v1669_v9 = vstv %s1966_s21 }
 0x5ba   :  { %1671 = vst.msk [vmem:[#allocation4] sm:$0x1] %vm1667_vm6, %v1669_v9 }
 0x5bb   :  { %2012 = shalt.err (!%p2009_p12)
}
 0x5bc   :  { %s2013_s24 = scalar_lea.hbm %s2510_s14, 16 }
 0x5bd   :  { %p2014_p13 = scmp.ne.s32.totalorder %s2510_s14, %s2013_s24  ;;  %p2017_p0 = scmp.lt.u32.totalorder %s2013_s24, %s2510_s14 }
 0x5bf   :  { %p2019_p1 = pnand %p2017_p0, %p2014_p13 }
 0x5c1   :  { %2022 = shalt.err (!%p2019_p1)
}
 0x5c2   :  { %1691 = dma.vmem_to_hbm [thread:$0]  %s1689_s11, 16, %s2510_s14, [#allocation5]  }
 0x5c3   :  { %2023 = dma.done.wait [#allocation3], 16  }
 0x5c4   :  { %2024 = vsyncadd [#allocation3], 4294967280 }
 0x5c5   :  { %2025 = dma.done.wait [#allocation5], 16  }
 0x5c6   :  { %2026 = vsyncadd [#allocation5], 4294967280 }
 0x5c7   :  { %1698 = vsyncpa [#allocation3], 1 }
 0x5c8   :  { %1699 = vsyncpa [#allocation5], 1 }

</bundles_post_ra>
